<compile_context>
chip_gen: v6e
topology: v6e:2x2x1
jax: 0.10.0
libtpu: 0.0.40
codegen_flags: <defaults>
</compile_context>

<pallas_src>
import math
import functools

import jax
import jax.numpy as jnp
from jax import lax
from jax.experimental import pallas as pl
from jax.experimental.pallas import tpu as pltpu


_VMEM_LIMIT = 32 * 1024 * 1024


# ----------------------------------------------------------------------------
# Kernel 1: cross-attention / ESIM interaction.  Grid over batch ("parallel").
# One program handles a full (S, D) pair: masked scores, row & column softmax
# (normalization folded after the alignment matmuls), and one lane-dense
# (S, 4D) store per enhanced feature map.
# ----------------------------------------------------------------------------
def _attn_kernel(h1_ref, h2_ref, mk1_ref, mk2_ref, m1_ref, m2_ref, *, d_k):
    h1 = h1_ref[0]            # (S, D) f32
    h2 = h2_ref[0]            # (S, D) f32
    mk1 = mk1_ref[0]          # (S, 1)
    mk2 = mk2_ref[0]          # (1, S)

    h1b = h1.astype(jnp.bfloat16)
    h2b = h2.astype(jnp.bfloat16)

    # scores = h1 @ h2.T / sqrt(d_k), contracting last dims (no XLU transpose).
    scores = lax.dot_general(h1b, h2b, (((1,), (1,)), ((), ())),
                             preferred_element_type=jnp.float32)
    scores = scores * jnp.float32(1.0 / math.sqrt(d_k))
    dead = (mk1 * mk2) == 0.0                      # (S, S)
    scores = jnp.where(dead, jnp.float32(-1e9), scores)

    # Row softmax (torch dim=-1): normalize AFTER the (S,S)x(S,D) matmul —
    # (S,D) multiply + EUP reciprocal instead of an (S,S) divide.
    e1 = jnp.exp(scores - jnp.max(scores, axis=-1, keepdims=True))
    inv_row = pl.reciprocal(jnp.sum(e1, axis=-1, keepdims=True), approx=True)
    a1 = jnp.dot(e1.astype(jnp.bfloat16), h2b,
                 preferred_element_type=jnp.float32) * inv_row

    # Column softmax (torch dim=1): EUP reciprocal + lane-broadcast multiply,
    # then contract axis 0 of p2 against axis 0 of h1 (avoids building p02.T).
    e2 = jnp.exp(scores - jnp.max(scores, axis=0, keepdims=True))
    inv_col = pl.reciprocal(jnp.sum(e2, axis=0, keepdims=True), approx=True)
    p2 = (e2 * inv_col).astype(jnp.bfloat16)
    a2 = lax.dot_general(p2, h1b, (((0,), (0,)), ((), ())),
                         preferred_element_type=jnp.float32)

    # Single lane-dense (S, 4D) store per branch (4D = 128 -> unmasked vst).
    m1_ref[0] = jnp.concatenate([h1, a1, h1 - a1, h1 * a1], axis=-1)
    m2_ref[0] = jnp.concatenate([h2, a2, h2 - a2, h2 * a2], axis=-1)


def esim_attention(h1, h2, mask1, mask2):
    B, S, D = h1.shape
    mk1 = mask1.reshape(B, S, 1).astype(jnp.float32)
    mk2 = mask2.reshape(B, 1, S).astype(jnp.float32)
    kernel = functools.partial(_attn_kernel, d_k=D)
    return pl.pallas_call(
        kernel,
        grid=(B,),
        in_specs=[
            pl.BlockSpec((1, S, D), lambda b: (b, 0, 0)),
            pl.BlockSpec((1, S, D), lambda b: (b, 0, 0)),
            pl.BlockSpec((1, S, 1), lambda b: (b, 0, 0)),
            pl.BlockSpec((1, 1, S), lambda b: (b, 0, 0)),
        ],
        out_specs=[
            pl.BlockSpec((1, S, 4 * D), lambda b: (b, 0, 0)),
            pl.BlockSpec((1, S, 4 * D), lambda b: (b, 0, 0)),
        ],
        out_shape=[
            jax.ShapeDtypeStruct((B, S, 4 * D), jnp.float32),
            jax.ShapeDtypeStruct((B, S, 4 * D), jnp.float32),
        ],
        compiler_params=pltpu.CompilerParams(
            dimension_semantics=("parallel",),
            vmem_limit_bytes=_VMEM_LIMIT),
    )(h1, h2, mk1, mk2)


# ----------------------------------------------------------------------------
# Kernel 2: one bidirectional LSTM layer for BOTH branches in one call.
#   x: (NB, S, In) with NB = 2B (branch-1 rows then branch-2 rows).
#   Input projection for all timesteps + both directions is hoisted out of the
#   time loop; the recurrence carries (h, c) of shape (2, NB, H) as fori_loop
#   values (register-resident) and does two (NB,H)x(H,4H) bf16 MXU dots/step.
#   The last layer folds max/mean pooling + the final FC into its epilogue.
# ----------------------------------------------------------------------------
def _lstm_layer_kernel(*refs, batch, final):
    if final:
        (x_ref, wih_ref, whh_ref, b_ref, fcw_ref, fcb_ref,
         out_ref, y_scr, pre_f_scr, pre_b_scr) = refs
        y_dst = y_scr
    else:
        (x_ref, wih_ref, whh_ref, b_ref,
         y_ref, pre_f_scr, pre_b_scr) = refs
        y_dst = y_ref

    NB, S, In = x_ref.shape
    H = whh_ref.shape[1]
    G = 4 * H

    # Hoisted input projection: one (NB*S, In) x (In, 4H) bf16 matmul per
    # direction (f32 accumulate) instead of S tiny matmuls in the recurrence.
    x_bf = x_ref[...].astype(jnp.bfloat16).reshape(NB * S, In)
    wih = wih_ref[...]                         # (2, In, 4H) bf16
    pre_f_scr[...] = (jnp.dot(x_bf, wih[0], preferred_element_type=jnp.float32)
                      + b_ref[0]).reshape(NB, S, G)
    pre_b_scr[...] = (jnp.dot(x_bf, wih[1], preferred_element_type=jnp.float32)
                      + b_ref[1]).reshape(NB, S, G)

    whh = whh_ref[...]                         # (2, H, 4H) bf16

    def step(t, carry):
        h, c = carry                           # (2, NB, H) f32 each
        tb = S - 1 - t
        pf = pre_f_scr[:, pl.ds(t, 1), :].reshape(NB, G)
        pb = pre_b_scr[:, pl.ds(tb, 1), :].reshape(NB, G)
        hb = h.astype(jnp.bfloat16)
        gf = pf + jnp.dot(hb[0], whh[0], preferred_element_type=jnp.float32)
        gb = pb + jnp.dot(hb[1], whh[1], preferred_element_type=jnp.float32)
        gates = jnp.stack([gf, gb], axis=0)    # (2, NB, 4H)
        # PyTorch gate order (i, f, g, o); elementwise math stays f32.
        i_g = jax.nn.sigmoid(gates[..., 0 * H:1 * H])
        f_g = jax.nn.sigmoid(gates[..., 1 * H:2 * H])
        g_g = jnp.tanh(gates[..., 2 * H:3 * H])
        o_g = jax.nn.sigmoid(gates[..., 3 * H:4 * H])
        c_new = f_g * c + i_g * g_g
        h_new = o_g * jnp.tanh(c_new)
        # fwd hidden at t -> y[:, t, :H]; bwd hidden (input index tb) -> y[:, tb, H:].
        y_dst[:, pl.ds(t, 1), 0:H] = h_new[0].reshape(NB, 1, H)
        y_dst[:, pl.ds(tb, 1), H:2 * H] = h_new[1].reshape(NB, 1, H)
        return (h_new, c_new)

    h0 = jnp.zeros((2, NB, H), jnp.float32)
    c0 = jnp.zeros((2, NB, H), jnp.float32)
    lax.fori_loop(0, S, step, (h0, c0), unroll=True)

    if final:
        # Fused epilogue: max/mean pooling over the full sequence (matches the
        # torch reference, including padded steps) + one (B,8H)x(8H,2) FC dot.
        y = y_dst[...]                         # (NB, S, 2H)
        mx = jnp.max(y, axis=1)                # (NB, 2H)
        av = jnp.mean(y, axis=1)               # (NB, 2H)
        B = batch
        feat = jnp.concatenate([mx[:B], av[:B], mx[B:], av[B:]], axis=-1)
        out_ref[...] = (jnp.dot(feat.astype(jnp.bfloat16),
                                fcw_ref[...].astype(jnp.bfloat16),
                                preferred_element_type=jnp.float32)
                        + fcb_ref[...])


def lstm_layer(x, layer_params, *, batch, final, fc_w=None, fc_b=None):
    wih, whh, b = layer_params                 # (2,In,4H), (2,H,4H), (2,1,4H) f32
    NB, S, _ = x.shape
    H = whh.shape[1]
    vmem = pl.BlockSpec(memory_space=pltpu.MemorySpace.VMEM)
    kernel = functools.partial(_lstm_layer_kernel, batch=batch, final=final)
    pre_scratch = [pltpu.VMEM((NB, S, 4 * H), jnp.float32),
                   pltpu.VMEM((NB, S, 4 * H), jnp.float32)]
    params = pltpu.CompilerParams(vmem_limit_bytes=_VMEM_LIMIT)
    wih_bf = wih.astype(jnp.bfloat16)
    whh_bf = whh.astype(jnp.bfloat16)
    if final:
        return pl.pallas_call(
            kernel,
            in_specs=[vmem] * 6,
            out_specs=vmem,
            out_shape=jax.ShapeDtypeStruct((batch, 2), jnp.float32),
            scratch_shapes=[pltpu.VMEM((NB, S, 2 * H), jnp.float32)] + pre_scratch,
            compiler_params=params,
        )(x, wih_bf, whh_bf, b, fc_w, fc_b)
    return pl.pallas_call(
        kernel,
        in_specs=[vmem] * 4,
        out_specs=vmem,
        out_shape=jax.ShapeDtypeStruct((NB, S, 2 * H), jnp.float32),
        scratch_shapes=pre_scratch,
        compiler_params=params,
    )(x, wih_bf, whh_bf, b)


# ----------------------------------------------------------------------------
# Full forward
# ----------------------------------------------------------------------------
def esim_forward(h1, h2, mask1, mask2, lstm_params, fc_w, fc_b):
    B = h1.shape[0]
    m1, m2 = esim_attention(h1, h2, mask1, mask2)
    # Both branches go through the SAME LSTM weights -> fuse along batch so
    # every matmul in the recurrence sees 2B rows per direction.
    x = jnp.concatenate([m1, m2], axis=0)      # (2B, S, 4D)
    n_layers = len(lstm_params)
    for li, p in enumerate(lstm_params):
        if li == n_layers - 1:
            # final nn.Dropout: identity in eval mode
            return lstm_layer(x, p, batch=B, final=True, fc_w=fc_w, fc_b=fc_b)
        x = lstm_layer(x, p, batch=B, final=False)
        # inter-layer LSTM dropout: identity in eval mode


# ----------------------------------------------------------------------------
# Deterministic parameter init (shapes follow nn.LSTM / nn.Linear in __init__).
# Weights are stored pre-transposed, directions stacked: (2, in, 4H)/(2, H, 4H);
# bias = b_ih + b_hh combined -> (2, 1, 4H).
# ----------------------------------------------------------------------------
def init_lstm_params(key, num_layers, input_dim, hidden):
    params = []
    in_dim = input_dim
    bound = 1.0 / math.sqrt(hidden)
    for _ in range(num_layers):
        key, *ks = jax.random.split(key, 7)

        def u(k, shape):
            return jax.random.uniform(k, shape, jnp.float32, -bound, bound)

        wih = jnp.stack([u(ks[0], (in_dim, 4 * hidden)),
                         u(ks[3], (in_dim, 4 * hidden))])
        whh = jnp.stack([u(ks[1], (hidden, 4 * hidden)),
                         u(ks[4], (hidden, 4 * hidden))])
        b = jnp.stack([u(ks[2], (1, 4 * hidden)),
                       u(ks[5], (1, 4 * hidden))])
        params.append((wih, whh, b))
        in_dim = 2 * hidden
    return params


if __name__ == "__main__":
    # config: bert_dim=32, lstm_dim=32, lstm_layers=2, seq_len=8, batch=2
    # (4*D = 4*H = 128 -> lane-aligned attention outputs and LSTM gate tiles)
    B, S, D, H, L = 2, 8, 32, 32, 2

    key = jax.random.PRNGKey(0)
    k1, k2, k3, k4, k5 = jax.random.split(key, 5)

    # BERT last_hidden_state stand-ins
    h1 = jax.random.normal(k1, (B, S, D), jnp.float32)
    h2 = jax.random.normal(k2, (B, S, D), jnp.float32)

    # attention masks with trailing padding
    len1 = jnp.array([S, S - 2])
    len2 = jnp.array([S - 1, S])
    mask1 = (jnp.arange(S)[None, :] < len1[:, None]).astype(jnp.float32)
    mask2 = (jnp.arange(S)[None, :] < len2[:, None]).astype(jnp.float32)

    lstm_params = init_lstm_params(k3, L, 4 * D, H)

    # fc: Linear(lstm_dim*2*4 -> 2); stored as (8H, 2) + (1, 2)
    fc_bound = 1.0 / math.sqrt(2 * H * 4)
    fc_w = jax.random.uniform(k4, (8 * H, 2), jnp.float32, -fc_bound, fc_bound)
    fc_b = jax.random.uniform(k5, (1, 2), jnp.float32, -fc_bound, fc_bound)

    out = esim_forward(h1, h2, mask1, mask2, lstm_params, fc_w, fc_b)
    jax.block_until_ready(out)
    assert out.shape == (B, 2)
    print("KERNEL_OK")
</pallas_src>

<mosaic_0001>
module attributes {stable_mosaic.version = 11 : i64} {
  func.func @_attn_kernel(%arg0: i32, %arg1: memref<1x8x32xf32, #tpu.memory_space<vmem>>, %arg2: memref<1x8x32xf32, #tpu.memory_space<vmem>>, %arg3: memref<1x8x1xf32, #tpu.memory_space<vmem>>, %arg4: memref<1x1x8xf32, #tpu.memory_space<vmem>>, %arg5: memref<1x8x128xf32, #tpu.memory_space<vmem>>, %arg6: memref<1x8x128xf32, #tpu.memory_space<vmem>>) attributes {dimension_semantics = [#tpu.dimension_semantics<parallel>], iteration_bounds = array<i64: 2>, scalar_prefetch = 0 : i64, scratch_operands = 0 : i64, tpu.core_type = #tpu.core_type<tc>, window_params = [{transform_indices = @transform_0, window_bounds = array<i64: 1, 8, 32>}, {transform_indices = @transform_1, window_bounds = array<i64: 1, 8, 32>}, {transform_indices = @transform_2, window_bounds = array<i64: 1, 8, 1>}, {transform_indices = @transform_3, window_bounds = array<i64: 1, 1, 8>}, {transform_indices = @transform_4, window_bounds = array<i64: 1, 8, 128>}, {transform_indices = @transform_5, window_bounds = array<i64: 1, 8, 128>}]} {
    %c0 = arith.constant 0 : index
    %c0_0 = arith.constant 0 : index
    %c0_1 = arith.constant 0 : index
    %0 = vector.load %arg1[%c0, %c0_0, %c0_1] : memref<1x8x32xf32, #tpu.memory_space<vmem>>, vector<1x8x32xf32>
    %1 = vector.shape_cast %0 : vector<1x8x32xf32> to vector<8x32xf32>
    %c0_2 = arith.constant 0 : index
    %c0_3 = arith.constant 0 : index
    %c0_4 = arith.constant 0 : index
    %2 = vector.load %arg2[%c0_2, %c0_3, %c0_4] : memref<1x8x32xf32, #tpu.memory_space<vmem>>, vector<1x8x32xf32>
    %3 = vector.shape_cast %2 : vector<1x8x32xf32> to vector<8x32xf32>
    %c0_5 = arith.constant 0 : index
    %c0_6 = arith.constant 0 : index
    %c0_7 = arith.constant 0 : index
    %4 = vector.load %arg3[%c0_5, %c0_6, %c0_7] : memref<1x8x1xf32, #tpu.memory_space<vmem>>, vector<1x8x1xf32>
    %5 = vector.shape_cast %4 : vector<1x8x1xf32> to vector<8x1xf32>
    %c0_8 = arith.constant 0 : index
    %c0_9 = arith.constant 0 : index
    %c0_10 = arith.constant 0 : index
    %6 = vector.load %arg4[%c0_8, %c0_9, %c0_10] : memref<1x1x8xf32, #tpu.memory_space<vmem>>, vector<1x1x8xf32>
    %7 = vector.shape_cast %6 : vector<1x1x8xf32> to vector<1x8xf32>
    %8 = arith.truncf %1 : vector<8x32xf32> to vector<8x32xbf16>
    %9 = arith.truncf %3 : vector<8x32xf32> to vector<8x32xbf16>
    %cst = arith.constant dense<0.000000e+00> : vector<8x8xf32>
    %10 = tpu.matmul %8, %9, %cst {dimension_numbers = #tpu.dot_dimension_numbers<[1], [1], [0], [0], [0, 0, 1, 0], [], []>} : vector<8x32xbf16>, vector<8x32xbf16>, vector<8x8xf32> -> vector<8x8xf32>
    %cst_11 = arith.constant 0.176776692 : f32
    %11 = vector.broadcast %cst_11 : f32 to vector<8x8xf32>
    %12 = arith.mulf %10, %11 : vector<8x8xf32>
    %13 = vector.broadcast %5 : vector<8x1xf32> to vector<8x8xf32>
    %14 = vector.broadcast %7 : vector<1x8xf32> to vector<8x8xf32>
    %15 = arith.mulf %13, %14 : vector<8x8xf32>
    %cst_12 = arith.constant 0.000000e+00 : f32
    %16 = vector.broadcast %cst_12 : f32 to vector<8x8xf32>
    %17 = arith.cmpf oeq, %15, %16 : vector<8x8xf32>
    %cst_13 = arith.constant -1.000000e+09 : f32
    %18 = vector.broadcast %cst_13 : f32 to vector<8x8xf32>
    %19 = arith.select %17, %18, %12 : vector<8x8xi1>, vector<8x8xf32>
    %cst_14 = arith.constant dense<0xFF800000> : vector<8xf32>
    %20 = vector.multi_reduction <maximumf>, %19, %cst_14 [1] : vector<8x8xf32> to vector<8xf32>
    %21 = vector.shape_cast %20 : vector<8xf32> to vector<8x1xf32>
    %22 = vector.broadcast %21 : vector<8x1xf32> to vector<8x8xf32>
    %23 = arith.subf %19, %22 : vector<8x8xf32>
    %24 = math.exp %23 : vector<8x8xf32>
    %cst_15 = arith.constant dense<0.000000e+00> : vector<8xf32>
    %25 = vector.multi_reduction <add>, %24, %cst_15 [1] : vector<8x8xf32> to vector<8xf32>
    %26 = vector.shape_cast %25 : vector<8xf32> to vector<8x1xf32>
    %27 = tpu.reciprocal %26 {approx = true} : vector<8x1xf32> -> vector<8x1xf32>
    %28 = arith.truncf %24 : vector<8x8xf32> to vector<8x8xbf16>
    %cst_16 = arith.constant dense<0.000000e+00> : vector<8x32xf32>
    %29 = tpu.matmul %28, %9, %cst_16 {dimension_numbers = #tpu.dot_dimension_numbers<[1], [0], [0], [1], [0, 0, 1, 1], [], []>} : vector<8x8xbf16>, vector<8x32xbf16>, vector<8x32xf32> -> vector<8x32xf32>
    %30 = vector.broadcast %27 : vector<8x1xf32> to vector<8x32xf32>
    %31 = arith.mulf %29, %30 : vector<8x32xf32>
    %cst_17 = arith.constant dense<0xFF800000> : vector<8xf32>
    %32 = vector.multi_reduction <maximumf>, %19, %cst_17 [0] : vector<8x8xf32> to vector<8xf32>
    %33 = vector.shape_cast %32 : vector<8xf32> to vector<1x8xf32>
    %34 = vector.broadcast %33 : vector<1x8xf32> to vector<8x8xf32>
    %35 = arith.subf %19, %34 : vector<8x8xf32>
    %36 = math.exp %35 : vector<8x8xf32>
    %cst_18 = arith.constant dense<0.000000e+00> : vector<8xf32>
    %37 = vector.multi_reduction <add>, %36, %cst_18 [0] : vector<8x8xf32> to vector<8xf32>
    %38 = vector.shape_cast %37 : vector<8xf32> to vector<1x8xf32>
    %39 = tpu.reciprocal %38 {approx = true} : vector<1x8xf32> -> vector<1x8xf32>
    %40 = vector.broadcast %39 : vector<1x8xf32> to vector<8x8xf32>
    %41 = arith.mulf %36, %40 : vector<8x8xf32>
    %42 = arith.truncf %41 : vector<8x8xf32> to vector<8x8xbf16>
    %cst_19 = arith.constant dense<0.000000e+00> : vector<8x32xf32>
    %43 = tpu.matmul %42, %8, %cst_19 {dimension_numbers = #tpu.dot_dimension_numbers<[0], [0], [1], [1], [0, 1, 1, 1], [], []>} : vector<8x8xbf16>, vector<8x32xbf16>, vector<8x32xf32> -> vector<8x32xf32>
    %44 = arith.subf %1, %31 : vector<8x32xf32>
    %45 = arith.mulf %1, %31 : vector<8x32xf32>
    %46 = tpu.concatenate %1, %31, %44, %45 in 1 : vector<8x32xf32>, vector<8x32xf32>, vector<8x32xf32>, vector<8x32xf32> -> vector<8x128xf32>
    %c0_20 = arith.constant 0 : index
    %c0_21 = arith.constant 0 : index
    %c0_22 = arith.constant 0 : index
    %47 = vector.load %arg5[%c0_20, %c0_21, %c0_22] : memref<1x8x128xf32, #tpu.memory_space<vmem>>, vector<1x8x128xf32>
    %48 = vector.shape_cast %47 : vector<1x8x128xf32> to vector<8x128xf32>
    %49 = vector.shape_cast %46 : vector<8x128xf32> to vector<1x8x128xf32>
    tpu.vector_store %arg5[%c0_20, %c0_21, %c0_22], %49 {strides = array<i32>} : memref<1x8x128xf32, #tpu.memory_space<vmem>>, vector<1x8x128xf32>,
    %50 = arith.subf %3, %43 : vector<8x32xf32>
    %51 = arith.mulf %3, %43 : vector<8x32xf32>
    %52 = tpu.concatenate %3, %43, %50, %51 in 1 : vector<8x32xf32>, vector<8x32xf32>, vector<8x32xf32>, vector<8x32xf32> -> vector<8x128xf32>
    %c0_23 = arith.constant 0 : index
    %c0_24 = arith.constant 0 : index
    %c0_25 = arith.constant 0 : index
    %53 = vector.load %arg6[%c0_23, %c0_24, %c0_25] : memref<1x8x128xf32, #tpu.memory_space<vmem>>, vector<1x8x128xf32>
    %54 = vector.shape_cast %53 : vector<1x8x128xf32> to vector<8x128xf32>
    %55 = vector.shape_cast %52 : vector<8x128xf32> to vector<1x8x128xf32>
    tpu.vector_store %arg6[%c0_23, %c0_24, %c0_25], %55 {strides = array<i32>} : memref<1x8x128xf32, #tpu.memory_space<vmem>>, vector<1x8x128xf32>,
    return
  }
  func.func @transform_0(%arg0: i32) -> (i32, i32, i32) {
    %c0_i32 = arith.constant 0 : i32
    %c0_i32_0 = arith.constant 0 : i32
    %c0_i32_1 = arith.constant 0 : i32
    return %arg0, %c0_i32, %c0_i32_0 : i32, i32, i32
  }
  func.func @transform_1(%arg0: i32) -> (i32, i32, i32) {
    %c0_i32 = arith.constant 0 : i32
    %c0_i32_0 = arith.constant 0 : i32
    %c0_i32_1 = arith.constant 0 : i32
    return %arg0, %c0_i32, %c0_i32_0 : i32, i32, i32
  }
  func.func @transform_2(%arg0: i32) -> (i32, i32, i32) {
    %c0_i32 = arith.constant 0 : i32
    %c0_i32_0 = arith.constant 0 : i32
    %c0_i32_1 = arith.constant 0 : i32
    return %arg0, %c0_i32, %c0_i32_0 : i32, i32, i32
  }
  func.func @transform_3(%arg0: i32) -> (i32, i32, i32) {
    %c0_i32 = arith.constant 0 : i32
    %c0_i32_0 = arith.constant 0 : i32
    %c0_i32_1 = arith.constant 0 : i32
    return %arg0, %c0_i32, %c0_i32_0 : i32, i32, i32
  }
  func.func @transform_4(%arg0: i32) -> (i32, i32, i32) {
    %c0_i32 = arith.constant 0 : i32
    %c0_i32_0 = arith.constant 0 : i32
    %c0_i32_1 = arith.constant 0 : i32
    return %arg0, %c0_i32, %c0_i32_0 : i32, i32, i32
  }
  func.func @transform_5(%arg0: i32) -> (i32, i32, i32) {
    %c0_i32 = arith.constant 0 : i32
    %c0_i32_0 = arith.constant 0 : i32
    %c0_i32_1 = arith.constant 0 : i32
    return %arg0, %c0_i32, %c0_i32_0 : i32, i32, i32
  }
}

</mosaic_0001>

<bundles_post_ra>
// kernel: tpu_custom_call.1
= control target key start
LH: loop header
LB: loop body
LE: loop exit
PB: predicated region body
PF: predicated region fallthrough
CT: control target
= control target key end

     0   :  { %11 = vsyncpa [#allocation3], 0  ;;  %s1213_s0 = inlined_call_operand.vmem [shape: f32[2,8,32], index: 0, kind: input, shape index: {}]   ;;  %s1214_s1 = inlined_call_operand.hbm [shape: f32[2,8,32], index: 1, kind: input, shape index: {}]   ;;  %s1215_s2 = inlined_call_operand.vmem [shape: f32[2,8,1], index: 2, kind: input, shape index: {}]   ;;  %s1216_s3 = inlined_call_operand.vmem [shape: f32[2,1,8], index: 3, kind: input, shape index: {}]   ;;  %s1217_s4 = inlined_call_operand.hbm [shape: f32[2,8,128], index: 4, kind: output, shape index: {0}]   ;;  %s1218_s5 = inlined_call_operand.hbm [shape: f32[2,8,128], index: 5, kind: output, shape index: {1}]  }
   0x1   :  { %13 = vsyncpa [#allocation3 + $0x1], 0 }
   0x2   :  { %14 = vsyncpa [#allocation4], 0 }
   0x3   :  { %16 = vsyncpa [#allocation4 + $0x1], 0 }
   0x4   :  { %17 = vsyncpa [#allocation7], 0 }
   0x5   :  { %19 = vsyncpa [#allocation7 + $0x1], 0  ;;  %s986_s18 = smov 0   ;;  %s988_s19 = smov 0  }
   0x6   :  { %s990_s20 = smov 0   ;;  %s992_s21 = smov 0  }
   0x7 LB: > { %s1007_s22 = sadd.s32 4294967295, %s945_s21   ;;  %s712_s23 = sadd.s32 4294967294, %s945_s21   ;;  %s945_s21 = sphi %s992_s21, %s1235_s21   ;;  %s941_s20 = sphi %s990_s20, %s1234_s20   ;;  %s937_s19 = sphi %s988_s19, %s1233_s19   ;;  %s933_s18 = sphi %s986_s18, %s1232_s18  }
   0x8   : > { %s1011_s24 = sadd.s32 1, %s945_s21   ;;  %s58_s25 = sadd.s32 1, %s941_s20 }
   0x9   : > { %s55_s26 = ssub.s32 %s945_s21, %s1011_s24  ;;  %p65_p0 = scmp.ne.s32.totalorder %s941_s20, %s937_s19 }
   0xa   : > { %p56_p1 = scmp.eq.s32.totalorder %s55_s26, 0  ;;  %p66_p2 = scmp.eq.s32.totalorder %s945_s21, 0 }
   0xb   : > { %p71_p3 = scmp.ne.s32.totalorder %s937_s19, %s933_s18  ;;  %p72_p4 = scmp.eq.s32.totalorder %s1007_s22, 0 }
   0xc   : > { %s1023_s27 = scalar_select %p56_p1, %s941_s20, %s58_s25  }
   0xd   : > { %p1025_p5 = por %p66_p2, %p65_p0  ;;  %p1029_p6 = por %p72_p4, %p71_p3 }
   0xe   : > { %p147_p7 = scmp.eq.s32.totalorder %s1007_s22, 1  ;;  %p153_p8 = scmp.eq.s32.totalorder %s712_s23, 1 }
   0xf   : > { %s1222_s29 = scalar_select %p1029_p6, 1, 0 }
  0x10   : > { %p774_p10 = scmp.lt.s32.totalorder %s945_s21, 2  ;;  %p1036_p11 = por %p147_p7, %p65_p0 }
  0x11   : > { %p1040_p12 = por %p153_p8, %p71_p3  ;;  %s206_s7 = sand.u32 1, %s941_s20  }
  0x12   : > { %s1223_s30 = scalar_select %p1036_p11, 1, 0 }
  0x13   : > { %s1224_s6 = scalar_select %p1040_p12, 1, 0 }
  0x14   : > { %s716_s8 = sshll.u32 %s945_s21, 7  ;;  %s715_s9 = sshll.u32 %s206_s7, 3 }
  0x15   : > { %s1049_s12 = scalar_lea.hbm %s1214_s1, %s716_s8  ;;  %s210_s13 = scalar_lea.vmem [#allocation2], %s715_s9 }
  0x16   : > { %s217_s14 = sshll.u32 %s210_s13, 4  ;;  %p1053_p13 = pnand %p774_p10, %p1025_p5  ;;  %s1057_s14 = int_to_ptr.vmem [resolvable:$true] %s217_s14 }
  0x17   : > { %s207_s16 = scalar_lea.sflag [#allocation3], %s206_s7  ;;  %s823_s17 = scalar_lea.hbm %s1049_s12, 128 }
  0x18   : > { %p824_p2 = scmp.ne.s32.totalorder %s1049_s12, %s823_s17  ;;  %p825_p3 = pneg %p1053_p13 }
  0x19   : > { %s828_s26 = scalar_lea.hbm %s1214_s1, 256  ;;  %p829_p5 = scmp.lt.s32.totalorder %s1049_s12, %s1214_s1 }
  0x1a   : > { %p826_p4 = pnand %p825_p3, %p824_p2  ;;  %p830_p8 = scmp.lt.s32.totalorder %s828_s26, %s823_s17 }
  0x1c   : > { %p827_p7 = pneg %p826_p4  ;;  %p831_p10 = por %p830_p8, %p829_p5 }
  0x1e   : > { %p832_p9 = pnand %p831_p10, %p827_p7 }
  0x20   : > { %835 = shalt.err (!%p832_p9)
}
  0x21   : > { %s836_s7 = scalar_lea.vmem %s1057_s14, 128  ;;  %s947_s9 = smov [#allocation2]  }
  0x22   : > { %p837_p0 = scmp.ne.s32.totalorder %s1057_s14, %s836_s7  ;;  %s841_s10 = sshll.u32 %s947_s9, 4  ;;  %s842_s10 = int_to_ptr.vmem [resolvable:$false] %s841_s10 }
  0x23   : > { %s843_s11 = scalar_lea.vmem %s842_s10, 256  ;;  %p844_p4 = scmp.lt.s32.totalorder %s1057_s14, %s842_s10 }
  0x24   : > { %p839_p1 = pnand %p837_p0, %p825_p3  ;;  %p845_p12 = scmp.lt.s32.totalorder %s843_s11, %s836_s7 }
  0x26   : > { %p840_p2 = pneg %p839_p1  ;;  %p846_p11 = por %p845_p12, %p844_p4 }
  0x28   : > { %p847_p6 = pnand %p846_p11, %p840_p2 }
  0x2a   : > { %850 = shalt.err (!%p847_p6)
}
  0x2b   : > { %766 = dma.hbm_to_vmem [thread:$0]  (!%p1053_p13), %s1049_s12, 128, %s1057_s14, %s207_s16  }
  0x2c   : > { %p1226_p9 = scmp.lt.s32.totalorder %s945_s21, 3  ;;  %p1227_p7 = scmp.ge.s32.totalorder %s945_s21, 1 }
  0x2e   : > { %p236_p0 = pnand %p1227_p7, %p1226_p9 }
  0x2f   : > { %s1084_s13 = sand.u32 (!%p236_p0), 1, %s937_s19   ;;  %p1228_p6 = scmp.ne.s32.totalorder (!%p236_p0), %s1222_s29, 0 }
  0x30   : > { %239 = sbr.rel (%p236_p0) target bundleno = 771 (0x303), region = 36  ;;  %s1087_s17 = sshll.u32 (!%p236_p0), %s1084_s13, 3 }
  0x31   : > { %s242_s23 = scalar_lea.sflag (!%p236_p0), [#allocation3], %s1084_s13  ;;  %s245_s15 = scalar_lea.vmem (!%p236_p0), [#allocation2], %s1087_s17 }
  0x35   : > { %920 = dma.done.wait (%p1228_p6), %s242_s23, 128  }
  0x36   : > { %922 = vsyncadd (%p1228_p6), %s242_s23, 4294967168  ;;  %p288_p11 = scmp.lt.s32.totalorder %s1007_s22, 1  ;;  %v948_v0 = vmov 0.0   ;;  %vm949_vm0 = vmmov 0   ;;  %v950_v1 = vmov 0   ;;  %v1106_v2 = vld [vmem:[%s245_s15] sm:$0xff] }
  0x37   : > { %739 = vmatprep.subr.bf16.mxu0 %v948_v0  ;;  %741 = vmatprep.mubr.msk.bf16.mxu0 %vm949_vm0, %v948_v0  ;;  %vm306_vm1 = vcmask 261120   ;;  %v305_v4 = vpack.c.bf16 %v1106_v2, %v1106_v2  ;;  %vm368_vm3 = vcmask 64512   ;;  %vm383_vm4 = vcmask 1043456   ;;  %s951_s11 = smov 32   ;;  %s952_s23 = smov 64  }
  0x38   : > { %s289_s12 = scalar_select %p288_p11, %s1007_s22, 1  ;;  %814 = vset.pattern.permute.xlu0 %v950_v1  ;;  %745 = vmatprep.subr.bf16.mxu1 %v948_v0  ;;  %vm522_vm5 = vcmask 523264   ;;  %vm524_vm6 = vcmask 785408  }
  0x39   : > { %747 = vmatprep.mubr.msk.bf16.mxu1 %vm949_vm0, %v948_v0  ;;  %v311_v5 = vsel %vm306_vm1, %v305_v4, 0  ;;  %v384_v26 = vsel %vm383_vm4, %v305_v4, 0  ;;  %s953_s15 = smov 96   ;;  %s546_s28 = scalar_lea.sflag [#allocation4], %s1084_s13 }
  0x3a   : > { %s721_s29 = sshll.u32 %s289_s12, 3  ;;  %740 = vmatpush3.bf16.xpose.msra.mxu0 %v311_v5  ;;  %s298_s10 = scalar_lea.vmem %s1216_s3, %s289_s12  ;;  %746 = vmatpush3.bf16.msra.mxu1 %v384_v26 }
  0x3b   : > { %s295_s25 = scalar_lea.vmem %s1215_s2, %s721_s29  ;;  %s291_s8 = scalar_lea.vmem %s1213_s0, %s721_s29  ;;  %v724_v8 = vld [vmem:[%s298_s10] ss:$0 sm:$0xff]  ;;  %751 = vmatprep.subr.bf16.mxu1 %v948_v0 }
  0x3c   : > { %v302_v3 = vld [vmem:[%s295_s25] sm:$0xff]  ;;  %s729_s12 = sshll.u32 %s1007_s22, 7  ;;  %s280_s29 = scalar_lea.vmem [#allocation5], %s1087_s17 }
  0x3d   : > { %356 = vperm.xlu0 %814, %v302_v3   ;;  %v1114_v6 = vld [vmem:[%s291_s8] sm:$0xff]  ;;  %s564_s14 = sshll.u32 %s280_s29, 4  ;;  %s1146_s26 = scalar_lea.hbm %s1217_s4, %s729_s12  ;;  %s565_s14 = int_to_ptr.vmem [resolvable:$true] %s564_s14 }
  0x3e   : > { %v304_v7 = vpack.c.bf16 %v1114_v6, %v1114_v6  ;;  %s851_s8 = scalar_lea.vmem %s565_s14, 128  ;;  %p1229_p13 = scmp.ne.s32.totalorder %s1223_s30, 0 }
  0x3f   : > { %p852_p12 = scmp.ne.s32.totalorder %s565_s14, %s851_s8  ;;  %s954_s7 = smov [#allocation5]  }
  0x40   : > { %v465_v42 = vsel %vm383_vm4, %v304_v7, 0  ;;  %s855_s9 = sshll.u32 %s954_s7, 4  ;;  %s856_s9 = int_to_ptr.vmem [resolvable:$false] %s855_s9 }
  0x41   : > { %742 = vmatmul.mubr.msk.bf16.vlgmr.msra.gmra.mxu0 %vm306_vm1, %v304_v7  ;;  %p853_p1 = pnand %p852_p12, %p1229_p13  ;;  %s857_s10 = scalar_lea.vmem %s856_s9, 256 }
  0x42   : > { %p858_p5 = scmp.lt.s32.totalorder %s565_s14, %s856_s9  ;;  %p859_p8 = scmp.lt.s32.totalorder %s857_s10, %s851_s8 }
  0x43   : > { %p854_p3 = pneg %p853_p1 }
  0x44   : > { %p860_p10 = por %p859_p8, %p858_p5 }
  0x46   : > { %p861_p2 = pnand %p860_p10, %p854_p3 }
  0xb8   : > { %v357_v9 = vpop.permute.xlu0 %356 }
  0xb9   : > { %v365_v10 = vmul.f32 %v724_v8, %v357_v9 }
  0xbb   : > { %vm366_vm2 = vcmp.eq.f32.partialorder %v365_v10, 0.0 }
 0x101   : > { %v347_v11 = vpop.f32.mrf.mxu0 }
 0x102   : > { %v353_v12 = vmul.f32 0.17677669, %v347_v11 }
 0x103   : > { %v743_v13 = vpop.f32.mrf.mxu0 }
 0x104   : > { %v367_v14 = vsel %vm366_vm2, -1e+09, %v353_v12 }
 0x105   : > { %v350_v15 = vpop.f32.mrf.mxu0  ;;  %v369_v16 = vsel %vm368_vm3, %v367_v14, -inf }
 0x106   : > { %370 = vmax.xlane.f32.xlu0 %v369_v16  ;;  %v427_v17 = vrot.slane %v369_v16, 4 }
 0x107   : > { %v744_v18 = vpop.f32.mrf.mxu0 }
 0x108   : > { %v428_v19 = vmax.f32 %v369_v16, %v427_v17 }
 0x10a   : > { %v429_v20 = vrot.slane %v428_v19, 2 }
 0x10c   : > { %v430_v21 = vmax.f32 %v428_v19, %v429_v20 }
 0x10e   : > { %v431_v22 = vrot.slane %v430_v21, 1 }
 0x110   : > { %v432_v23 = vmax.f32 %v430_v21, %v431_v22 }
 0x112   : > { %v433_v24 = vsub.f32 %v367_v14, %v432_v23 }
 0x114   : > { %v434_v25 = vmul.f32 1.442695, %v433_v24 }
 0x116   : > { %815 = vpow2.f32 %v434_v25 }
 0x123   : > { %v816_v27 = vpop.eup %815 }
 0x124   : > { %v436_v28 = vsel %vm368_vm3, %v816_v27, 0.0 }
 0x125   : > { %v437_v29 = vrot.slane %v436_v28, 4 }
 0x127   : > { %v438_v30 = vadd.f32 %v437_v29, %v436_v28 }
 0x129   : > { %v439_v31 = vrot.slane %v438_v30, 2 }
 0x12b   : > { %v440_v32 = vadd.f32 %v439_v31, %v438_v30 }
 0x12d   : > { %v441_v33 = vrot.slane %v440_v32, 1 }
 0x12f   : > { %v442_v34 = vadd.f32 %v441_v33, %v440_v32 }
 0x131   : > { %817 = vrcp.f32 %v442_v34 }
 0x13e   : > { %v818_v35 = vpop.eup %817 }
 0x13f   : > { %v444_v36 = vmul.f32 %v818_v35, %v816_v27 }
 0x141   : > { %v445_v37 = vpack.c.bf16 %v444_v36, %v444_v36 }
 0x143   : > { %446 = vxpose.xlu1.c.b16.start.end [1/1] (short) (narrow) %v445_v37, 16 }
 0x18f   : > { %v371_v38 = vpop.xlane.xlu0 %370 }
 0x190   : > { %v372_v39 = vsub.f32 %v367_v14, %v371_v38 }
 0x192   : > { %v373_v40 = vmul.f32 1.442695, %v372_v39 }
 0x194   : > { %819 = vpow2.f32 %v373_v40 }
 0x1a1   : > { %v820_v41 = vpop.eup %819 }
 0x1a2   : > { %v375_v43 = vsel %vm368_vm3, %v820_v41, 0.0  ;;  %v379_v44 = vpack.c.bf16 %v820_v41, %v820_v41 }
 0x1a3   : > { %376 = vadd.xlane.f32.xlu1 %v375_v43 }
 0x1a4   : > { %748 = vmatmul.mubr.msk.bf16.vlgmr.msra.gmra.mxu1 %vm368_vm3, %v379_v44 }
 0x1a5   : > { %752 = vmatpush3.bf16.msra.mxu1 %v465_v42  ;;  %753 = vmatprep.mubr.msk.bf16.mxu1 %vm949_vm0, %v948_v0  ;;  %v454_v45 = vpop.trf.xlu1 }
 0x1ac   : > { %754 = vmatmul.mubr.msk.bf16.vlgmr.msra.gmra.mxu1 %vm368_vm3, %v454_v45 }
 0x22c   : > { %v377_v46 = vpop.xlane.xlu1 %376 }
 0x22d   : > { %821 = vrcp.f32 %v377_v46 }
 0x23a   : > { %v822_v47 = vpop.eup %821 }
 0x264   : > { %v420_v48 = vpop.f32.mrf.mxu1 }
 0x265   : > { %v426_v49 = vmul.f32 %v822_v47, %v420_v48 }
 0x266   : > { %v749_v50 = vpop.f32.mrf.mxu1 }
 0x267   : > { %510 = vrot.lane.b32.xlu1 %v426_v49, %s951_s11  ;;  %v507_v51 = vsub.f32 %v1114_v6, %v426_v49  ;;  %v508_v53 = vmul.f32 %v426_v49, %v1114_v6 }
 0x268   : > { %v423_v52 = vpop.f32.mrf.mxu1 }
 0x269   : > { %514 = vrot.lane.b32.xlu0 %v507_v51, %s952_s23 }
 0x26a   : > { %v750_v54 = vpop.f32.mrf.mxu1 }
 0x26b   : > { %518 = vrot.lane.b32.xlu1 %v508_v53, %s953_s15 }
 0x26c   : > { %v501_v55 = vpop.f32.mrf.mxu1 }
 0x26d   : > { %v527_v58 = vsub.f32 %v1106_v2, %v501_v55  ;;  %v528_v60 = vmul.f32 %v501_v55, %v1106_v2 }
 0x26e   : > { %v755_v56 = vpop.f32.mrf.mxu1 }
 0x26f   : > { %530 = vrot.lane.b32.xlu1 %v501_v55, %s951_s11 }
 0x270   : > { %v504_v57 = vpop.f32.mrf.mxu1 }
 0x272   : > { %v756_v59 = vpop.f32.mrf.mxu1 }
 0x273   : > { %534 = vrot.lane.b32.xlu1 %v527_v58, %s952_s23 }
 0x277   : > { %538 = vrot.lane.b32.xlu1 %v528_v60, %s953_s15 }
 0x2d9   : > { %v511_v61 = vpop.permute.xlu1 %510 }
 0x2da   : > { %v521_v62 = vsel %vm306_vm1, %v1114_v6, %v511_v61 }
 0x2db   : > { %v515_v63 = vpop.permute.xlu0 %514 }
 0x2dc   : > { %v523_v0 = vsel %vm522_vm5, %v521_v62, %v515_v63 }
 0x2dd   : > { %v519_v1 = vpop.permute.xlu1 %518 }
 0x2de   : > { %v525_v3 = vsel %vm524_vm6, %v523_v0, %v519_v1 }
 0x2df   : > { %526 = vst [vmem:[%s280_s29] sm:$0xff] %v525_v3 }
 0x2e0   : > { %864 = shalt.err (!%p861_p2)
}
 0x2e1   : > { %s865_s11 = scalar_lea.hbm %s1146_s26, 128  ;;  %s869_s29 = scalar_lea.hbm %s1217_s4, 256 }
 0x2e2   : > { %p866_p4 = scmp.ne.s32.totalorder %s1146_s26, %s865_s11  ;;  %p870_p0 = scmp.lt.s32.totalorder %s1146_s26, %s1217_s4 }
 0x2e3   : > { %p871_p6 = scmp.lt.s32.totalorder %s869_s29, %s865_s11 }
 0x2e4   : > { %p867_p9 = pnand %p866_p4, %p1229_p13 }
 0x2e5   : > { %p872_p11 = por %p871_p6, %p870_p0 }
 0x2e6   : > { %p868_p7 = pneg %p867_p9 }
 0x2e8   : > { %p873_p12 = pnand %p872_p11, %p868_p7 }
 0x2ea   : > { %876 = shalt.err (!%p873_p12)
}
 0x2eb   : > { %759 = dma.vmem_to_hbm [thread:$0]  (%p1229_p13), %s565_s14, 128, %s1146_s26, %s546_s28   ;;  %v531_v4 = vpop.permute.xlu1 %530 }
 0x2ec   : > { %s287_s8 = scalar_lea.vmem [#allocation6], %s1087_s17  ;;  %v541_v6 = vsel %vm306_vm1, %v1106_v2, %v531_v4  ;;  %s1175_s11 = scalar_lea.hbm %s1218_s5, %s729_s12 }
 0x2ed   : > { %s577_s7 = sshll.u32 %s287_s8, 4  ;;  %s551_s14 = scalar_lea.sflag [#allocation7], %s1084_s13  ;;  %s578_s7 = int_to_ptr.vmem [resolvable:$true] %s577_s7 }
 0x2ee   : > { %s877_s26 = scalar_lea.vmem %s578_s7, 128  ;;  %s955_s17 = smov [#allocation6]  }
 0x2ef   : > { %v535_v5 = vpop.permute.xlu1 %534  ;;  %p878_p1 = scmp.ne.s32.totalorder %s578_s7, %s877_s26  ;;  %s881_s28 = sshll.u32 %s955_s17, 4  ;;  %s882_s28 = int_to_ptr.vmem [resolvable:$false] %s881_s28 }
 0x2f0   : > { %v542_v7 = vsel %vm522_vm5, %v541_v6, %v535_v5  ;;  %s883_s23 = scalar_lea.vmem %s882_s28, 256  ;;  %p884_p8 = scmp.lt.s32.totalorder %s578_s7, %s882_s28 }
 0x2f1   : > { %p879_p3 = pnand %p878_p1, %p1229_p13  ;;  %p885_p10 = scmp.lt.s32.totalorder %s883_s23, %s877_s26 }
 0x2f3   : > { %v539_v8 = vpop.permute.xlu1 %538  ;;  %p880_p5 = pneg %p879_p3  ;;  %p886_p2 = por %p885_p10, %p884_p8 }
 0x2f4   : > { %v543_v9 = vsel %vm524_vm6, %v542_v7, %v539_v8 }
 0x2f5   : > { %544 = vst [vmem:[%s287_s8] sm:$0xff] %v543_v9  ;;  %p887_p4 = pnand %p886_p2, %p880_p5 }
 0x2f7   : > { %890 = shalt.err (!%p887_p4)
}
 0x2f8   : > { %s891_s22 = scalar_lea.hbm %s1175_s11, 128  ;;  %s895_s15 = scalar_lea.hbm %s1218_s5, 256 }
 0x2f9   : > { %p892_p9 = scmp.ne.s32.totalorder %s1175_s11, %s891_s22  ;;  %p896_p6 = scmp.lt.s32.totalorder %s1175_s11, %s1218_s5 }
 0x2fa   : > { %p897_p11 = scmp.lt.s32.totalorder %s895_s15, %s891_s22 }
 0x2fb   : > { %p893_p7 = pnand %p892_p9, %p1229_p13 }
 0x2fc   : > { %p898_p12 = por %p897_p11, %p896_p6 }
 0x2fd   : > { %p894_p0 = pneg %p893_p7 }
 0x2ff   : > { %p899_p1 = pnand %p898_p12, %p894_p0 }
 0x301   : > { %902 = shalt.err (!%p899_p1)
}
 0x302   : > { %760 = dma.vmem_to_hbm [thread:$0]  (%p1229_p13), %s578_s7, 128, %s1175_s11, %s551_s14  }
 0x303 PF: > { %s589_s25 = sand.u32 1, %s933_s18   ;;  %p1230_p3 = scmp.ne.s32.totalorder %s1224_s6, 0 }
 0x304   : > { %p1231_p5 = scmp.ge.s32.totalorder %s945_s21, 2  ;;  %s590_s8 = scalar_lea.sflag [#allocation4], %s589_s25 }
 0x306   : > { %p768_p8 = pnand %p1231_p5, %p1230_p3 }
 0x308   : > { %p769_p10 = pneg %p768_p8 }
 0x30a   : > { %924 = dma.done.wait (%p769_p10), %s590_s8, 128  }
 0x30b   : > { %926 = vsyncadd (%p769_p10), %s590_s8, 4294967168  ;;  %s599_s9 = scalar_lea.sflag [#allocation7], %s589_s25 }
 0x30c   : > { %928 = dma.done.wait (%p769_p10), %s599_s9, 128  }
 0x30d   : > { %930 = vsyncadd (%p769_p10), %s599_s9, 4294967168  ;;  %p22_p13 = scmp.ge.s32.totalorder %s1011_s24, 4   ;;  %s1232_s18 = smov %s937_s19 }
 0x30e   : > { %s1233_s19 = smov %s941_s20  ;;  %s1234_s20 = smov %s1023_s27 }
 0x30f   : > { %s1235_s21 = smov %s1011_s24  ;;  %24 = sbr.rel (!%p22_p13) target bundleno = 7 (0x7), region = 107 }
 0x314   :  { %604 = vsyncpa [#allocation3], 1 }
 0x315   :  { %606 = vsyncpa [#allocation3 + $0x1], 1 }
 0x316   :  { %607 = vsyncpa [#allocation4], 1 }
 0x317   :  { %609 = vsyncpa [#allocation4 + $0x1], 1 }
 0x318   :  { %610 = vsyncpa [#allocation7], 1 }
 0x319   :  { %612 = vsyncpa [#allocation7 + $0x1], 1 }

</bundles_post_ra>
